<compile_context>
chip_gen: v7x
topology: tpu7x:2x2x1
jax: 0.10.0
libtpu: 0.0.40
codegen_flags: <defaults>
</compile_context>

<pallas_src>
import functools

import jax
import jax.numpy as jnp
from jax.experimental import pallas as pl
from jax.experimental.pallas import tpu as pltpu


# ---------------------------------------------------------------------------
# Prologue: project K and V once per (batch, kv-tile) with block-diagonal
# (E, E) weights.  Removes the per-head (tk, D) @ (D, D) matmuls from the
# flash inner loop (they were recomputed Lq/tq times there).
# ---------------------------------------------------------------------------
def _project_kv_kernel(k_ref, v_ref, wk_ref, wv_ref, kp_ref, vp_ref):
    kp_ref[0] = jnp.dot(k_ref[0], wk_ref[...],
                        preferred_element_type=jnp.float32).astype(kp_ref.dtype)
    vp_ref[0] = jnp.dot(v_ref[0], wv_ref[...],
                        preferred_element_type=jnp.float32).astype(vp_ref.dtype)


def _project_kv(keys, values, wk_bd, wv_bd, *, tile):
    N, L, E = keys.shape
    return pl.pallas_call(
        _project_kv_kernel,
        out_shape=(jax.ShapeDtypeStruct((N, L, E), keys.dtype),
                   jax.ShapeDtypeStruct((N, L, E), values.dtype)),
        grid=(N, L // tile),
        in_specs=[
            pl.BlockSpec((1, tile, E), lambda n, i: (n, i, 0)),
            pl.BlockSpec((1, tile, E), lambda n, i: (n, i, 0)),
            pl.BlockSpec((E, E), lambda n, i: (0, 0)),
            pl.BlockSpec((E, E), lambda n, i: (0, 0)),
        ],
        out_specs=[
            pl.BlockSpec((1, tile, E), lambda n, i: (n, i, 0)),
            pl.BlockSpec((1, tile, E), lambda n, i: (n, i, 0)),
        ],
        compiler_params=pltpu.CompilerParams(
            dimension_semantics=("parallel", "parallel")),
    )(keys, values, wk_bd, wv_bd)


# ---------------------------------------------------------------------------
# Flash-attention kernel: online softmax over kv tiles, pre-projected K/V,
# fused Q projection + fc_out epilogue.
# ---------------------------------------------------------------------------
def _flash_attn_kernel(active_ref, q_ref, k_ref, v_ref, bias_ref,
                       wq_ref, wo_ref, bo_ref, out_ref,
                       qp_sc, m_sc, l_sc, acc_sc, *, heads, head_dim):
    H, D = heads, head_dim
    n = pl.program_id(0)
    ki = pl.program_id(2)
    nk = pl.num_programs(2)

    @pl.when(ki == 0)
    def _init():
        m_sc[...] = jnp.full_like(m_sc, -jnp.inf)
        l_sc[...] = jnp.zeros_like(l_sc)
        acc_sc[...] = jnp.zeros_like(acc_sc)
        # One lane-dense (tq, E) @ (E, E) block-diagonal Q projection; the
        # 1/sqrt(embed_size) softmax scale is folded into the weight.
        qp_sc[...] = jnp.dot(q_ref[0], wq_ref[...],
                             preferred_element_type=jnp.float32
                             ).astype(qp_sc.dtype)

    # Skip fully-padded kv tiles (per-(batch, tile) flags, scalar-prefetched).
    @pl.when(active_ref[n, ki] != 0)
    def _compute():
        kp = k_ref[0]                       # (tk, E) pre-projected keys (bf16)
        vp = v_ref[0]                       # (tk, E) pre-projected values (bf16)
        bias = bias_ref[0]                  # (1, tk) additive 0 / -1e20 (f32)

        pv_parts = []
        alpha_parts = []
        for h in range(H):
            sl = slice(h * D, (h + 1) * D)
            # (tq, D) . (tk, D)^T -> (tq, tk), f32 accumulation on the MXU.
            s = jax.lax.dot_general(
                qp_sc[:, sl], kp[:, sl],
                dimension_numbers=(((1,), (1,)), ((), ())),
                preferred_element_type=jnp.float32)
            s = s + bias                    # one vadd; no compare/select chain

            m_prev = m_sc[h]                                   # (tq, 1)
            m_new = jnp.maximum(m_prev, jnp.max(s, axis=-1, keepdims=True))
            alpha = jnp.exp(m_prev - m_new)
            p = jnp.exp(s - m_new)
            l_sc[h] = alpha * l_sc[h] + jnp.sum(p, axis=-1, keepdims=True)
            m_sc[h] = m_new

            pv_parts.append(jnp.dot(p.astype(vp.dtype), vp[:, sl],
                                    preferred_element_type=jnp.float32))
            alpha_parts.append(jnp.broadcast_to(alpha, (alpha.shape[0], D)))

        # Single full-lane-width accumulator update (no masked 32-lane stores).
        pv_all = jnp.concatenate(pv_parts, axis=-1)            # (tq, E)
        alpha_all = jnp.concatenate(alpha_parts, axis=-1)      # (tq, E)
        acc_sc[...] = alpha_all * acc_sc[...] + pv_all

    @pl.when(ki == nk - 1)
    def _finalize():
        # Deferred per-head softmax normalization (approx reciprocal -> EUP),
        # then one lane-dense (tq, E) @ (E, E) fc_out matmul + bias.
        inv_parts = [
            jnp.broadcast_to(pl.reciprocal(l_sc[h], approx=True),
                             (l_sc.shape[1], D))
            for h in range(H)
        ]
        inv_all = jnp.concatenate(inv_parts, axis=-1)          # (tq, E)
        ctx = (acc_sc[...] * inv_all).astype(wo_ref.dtype)
        out = jnp.dot(ctx, wo_ref[...],
                      preferred_element_type=jnp.float32) + bo_ref[...]
        # TODO(synk): nn.Dropout is stochastic in training mode; implemented
        # here as inference-mode identity.
        out_ref[0] = out.astype(out_ref.dtype)


def bert_self_attention(values, keys, query, mask, params, heads,
                        *, block_q=256, block_k=256):
    """Forward of BertSelfAttention.  `mask` is a key-padding mask of shape
    (N, 1, 1, Lk) (nonzero = attend), matching the training script's usage."""
    N, Lv, E = values.shape
    Lk = keys.shape[1]
    Lq = query.shape[1]
    H = heads
    D = E // H
    assert H * D == E and Lv == Lk

    tq = min(block_q, Lq)
    tk = min(block_k, Lk)
    assert Lq % tq == 0 and Lk % tk == 0
    n_kv = Lk // tk

    compute_dtype = jnp.bfloat16        # MXU inputs; accumulation stays f32

    scale = 1.0 / (float(E) ** 0.5)
    eye_h = jnp.eye(H, dtype=jnp.float32)
    # nn.Linear applies ONE shared (D, D) weight to every head's D-slice of the
    # lane-dense (.., E) activation -> block-diagonal (E, E) = kron(I_H, W.T).
    wq_bd = jnp.kron(eye_h, params['wq'].T.astype(jnp.float32) * scale)
    wk_bd = jnp.kron(eye_h, params['wk'].T.astype(jnp.float32))
    wv_bd = jnp.kron(eye_h, params['wv'].T.astype(jnp.float32))
    wo_t = params['wo'].T.astype(jnp.float32)
    bo_r = params['bo'].reshape(1, E).astype(jnp.float32)

    wq_bd = wq_bd.astype(compute_dtype)
    wk_bd = wk_bd.astype(compute_dtype)
    wv_bd = wv_bd.astype(compute_dtype)
    wo_c = wo_t.astype(compute_dtype)

    q_c = query.astype(compute_dtype)
    k_c = keys.astype(compute_dtype)
    v_c = values.astype(compute_dtype)

    # Key-padding mask -> additive f32 bias and per-kv-tile "any live key"
    # flags (scalar-prefetched so fully-padded tiles are skipped).
    mask_keys = mask.reshape(N, Lk)
    bias = jnp.where(mask_keys == 0, jnp.float32(-1e20),
                     jnp.float32(0.0)).reshape(N, 1, Lk)
    active = (mask_keys.reshape(N, n_kv, tk) != 0).any(axis=-1).astype(jnp.int32)

    # Hoisted K/V projection (once per (batch, kv-tile), not per q-tile).
    kp, vp = _project_kv(k_c, v_c, wk_bd, wv_bd, tile=tk)

    kernel = functools.partial(_flash_attn_kernel, heads=H, head_dim=D)
    # N * (Lq // tq) parallel tiles keep both v7x TensorCores busy; the kv
    # (reduction) axis is innermost / "arbitrary".
    grid = (N, Lq // tq, n_kv)

    return pl.pallas_call(
        kernel,
        out_shape=jax.ShapeDtypeStruct((N, Lq, E), query.dtype),
        grid_spec=pltpu.PrefetchScalarGridSpec(
            num_scalar_prefetch=1,
            grid=grid,
            in_specs=[
                pl.BlockSpec((1, tq, E), lambda n, qi, ki, act: (n, qi, 0)),  # q
                pl.BlockSpec((1, tk, E), lambda n, qi, ki, act: (n, ki, 0)),  # kp
                pl.BlockSpec((1, tk, E), lambda n, qi, ki, act: (n, ki, 0)),  # vp
                pl.BlockSpec((1, 1, tk), lambda n, qi, ki, act: (n, 0, ki)),  # bias
                # Constant-index weight blocks; on v7x (64 MiB VMEM) consider
                # pipeline_mode=pl.Buffered(1) on these once E / tiles grow.
                pl.BlockSpec((E, E), lambda n, qi, ki, act: (0, 0)),          # Wq_bd
                pl.BlockSpec((E, E), lambda n, qi, ki, act: (0, 0)),          # Wo.T
                pl.BlockSpec((1, E), lambda n, qi, ki, act: (0, 0)),          # bo
            ],
            out_specs=pl.BlockSpec((1, tq, E), lambda n, qi, ki, act: (n, qi, 0)),
            scratch_shapes=[
                pltpu.VMEM((tq, E), compute_dtype),   # projected+scaled queries
                pltpu.VMEM((H, tq, 1), jnp.float32),  # running max per head
                pltpu.VMEM((H, tq, 1), jnp.float32),  # running softmax denom
                pltpu.VMEM((tq, E), jnp.float32),     # lane-dense context acc
            ]),
        compiler_params=pltpu.CompilerParams(
            dimension_semantics=("parallel", "parallel", "arbitrary"),
            # Below v7x's 64 MiB physical VMEM; raise toward ~96 MiB on
            # v5e/v6e (128 MiB physical) when scaling E / tq / tk further.
            vmem_limit_bytes=48 * 1024 * 1024),
    )(active, q_c, kp, vp, bias, wq_bd, wo_c, bo_r)


def reference(values, keys, query, mask, params, heads):
    """Pure-JAX mirror of the PyTorch forward (eval mode), full f32 precision."""
    N, Lv, E = values.shape
    Lk, Lq = keys.shape[1], query.shape[1]
    D = E // heads
    hp = jax.lax.Precision.HIGHEST
    v = jnp.einsum('nlhd,od->nlho', values.reshape(N, Lv, heads, D),
                   params['wv'], precision=hp)
    k = jnp.einsum('nlhd,od->nlho', keys.reshape(N, Lk, heads, D),
                   params['wk'], precision=hp)
    q = jnp.einsum('nlhd,od->nlho', query.reshape(N, Lq, heads, D),
                   params['wq'], precision=hp)
    energy = jnp.einsum('nqhd,nkhd->nhqk', q, k, precision=hp)
    energy = jnp.where(mask == 0, jnp.float32(-1e20), energy)
    attn = jax.nn.softmax(energy / (float(E) ** 0.5), axis=3)
    ctx = jnp.einsum('nhql,nlhd->nqhd', attn, v, precision=hp).reshape(N, Lq, E)
    return jnp.einsum('nqe,oe->nqo', ctx, params['wo'], precision=hp) + params['bo']


if __name__ == "__main__":
    # Small but TPU-shaped: E is a multiple of 128 (lane-dense) and L spans
    # multiple q / kv tiles so the online-softmax and tile-skip paths run.
    N, L, E, H = 2, 512, 128, 4
    D = E // H

    key = jax.random.PRNGKey(0)
    k1, k2, k3, k4, k5, k6, k7, k8 = jax.random.split(key, 8)
    values = jax.random.normal(k1, (N, L, E), jnp.float32)
    keys = jax.random.normal(k2, (N, L, E), jnp.float32)
    query = jax.random.normal(k3, (N, L, E), jnp.float32)

    # Padding mask (N, 1, 1, L): batch 1 keeps only its first 192 keys, so its
    # second kv tile (tk=256) is fully padded -> exercises the skip path.
    lens = jnp.array([L, 192])
    mask = (jnp.arange(L)[None, :] < lens[:, None]).astype(jnp.int32)
    mask = mask.reshape(N, 1, 1, L)

    params = {
        'wv': 0.1 * jax.random.normal(k4, (D, D), jnp.float32),
        'wk': 0.1 * jax.random.normal(k5, (D, D), jnp.float32),
        'wq': 0.1 * jax.random.normal(k6, (D, D), jnp.float32),
        'wo': 0.1 * jax.random.normal(k7, (E, E), jnp.float32),
        'bo': 0.1 * jax.random.normal(k8, (E,), jnp.float32),
    }

    out = bert_self_attention(values, keys, query, mask, params, H)
    out = jax.block_until_ready(out)

    ref = reference(values, keys, query, mask, params, H)
    assert out.shape == (N, L, E)
    err = float(jnp.max(jnp.abs(out - ref)))
    # bf16 MXU inputs vs f32 HIGHEST-precision reference -> loosened tolerance.
    assert jnp.allclose(out, ref, atol=3e-2, rtol=3e-2), err
    print("KERNEL_OK")
</pallas_src>

<mosaic_0001>
module attributes {stable_mosaic.version = 11 : i64} {
  func.func @_project_kv_kernel(%arg0: i32, %arg1: i32, %arg2: memref<1x256x128xbf16, #tpu.memory_space<vmem>>, %arg3: memref<1x256x128xbf16, #tpu.memory_space<vmem>>, %arg4: memref<128x128xbf16, #tpu.memory_space<vmem>>, %arg5: memref<128x128xbf16, #tpu.memory_space<vmem>>, %arg6: memref<1x256x128xbf16, #tpu.memory_space<vmem>>, %arg7: memref<1x256x128xbf16, #tpu.memory_space<vmem>>) attributes {dimension_semantics = [#tpu.dimension_semantics<parallel>, #tpu.dimension_semantics<parallel>], iteration_bounds = array<i64: 2, 2>, scalar_prefetch = 0 : i64, scratch_operands = 0 : i64, tpu.core_type = #tpu.core_type<tc>, window_params = [{transform_indices = @transform_0, window_bounds = array<i64: 1, 256, 128>}, {transform_indices = @transform_1, window_bounds = array<i64: 1, 256, 128>}, {pipeline_mode = #tpu.pipeline_mode<synchronous>, transform_indices = @transform_2, window_bounds = array<i64: 128, 128>}, {pipeline_mode = #tpu.pipeline_mode<synchronous>, transform_indices = @transform_3, window_bounds = array<i64: 128, 128>}, {transform_indices = @transform_4, window_bounds = array<i64: 1, 256, 128>}, {transform_indices = @transform_5, window_bounds = array<i64: 1, 256, 128>}]} {
    %c0 = arith.constant 0 : index
    %c0_0 = arith.constant 0 : index
    %c0_1 = arith.constant 0 : index
    %0 = vector.load %arg2[%c0, %c0_0, %c0_1] : memref<1x256x128xbf16, #tpu.memory_space<vmem>>, vector<1x256x128xbf16>
    %1 = vector.shape_cast %0 : vector<1x256x128xbf16> to vector<256x128xbf16>
    %c0_2 = arith.constant 0 : index
    %c0_3 = arith.constant 0 : index
    %2 = vector.load %arg4[%c0_2, %c0_3] : memref<128x128xbf16, #tpu.memory_space<vmem>>, vector<128x128xbf16>
    %cst = arith.constant dense<0.000000e+00> : vector<256x128xf32>
    %3 = tpu.matmul %1, %2, %cst {dimension_numbers = #tpu.dot_dimension_numbers<[1], [0], [0], [1], [0, 0, 1, 1], [], []>} : vector<256x128xbf16>, vector<128x128xbf16>, vector<256x128xf32> -> vector<256x128xf32>
    %4 = arith.truncf %3 : vector<256x128xf32> to vector<256x128xbf16>
    %c0_4 = arith.constant 0 : index
    %c0_5 = arith.constant 0 : index
    %c0_6 = arith.constant 0 : index
    %5 = vector.load %arg6[%c0_4, %c0_5, %c0_6] : memref<1x256x128xbf16, #tpu.memory_space<vmem>>, vector<1x256x128xbf16>
    %6 = vector.shape_cast %5 : vector<1x256x128xbf16> to vector<256x128xbf16>
    %7 = vector.shape_cast %4 : vector<256x128xbf16> to vector<1x256x128xbf16>
    tpu.vector_store %arg6[%c0_4, %c0_5, %c0_6], %7 {strides = array<i32>} : memref<1x256x128xbf16, #tpu.memory_space<vmem>>, vector<1x256x128xbf16>,
    %c0_7 = arith.constant 0 : index
    %c0_8 = arith.constant 0 : index
    %c0_9 = arith.constant 0 : index
    %8 = vector.load %arg3[%c0_7, %c0_8, %c0_9] : memref<1x256x128xbf16, #tpu.memory_space<vmem>>, vector<1x256x128xbf16>
    %9 = vector.shape_cast %8 : vector<1x256x128xbf16> to vector<256x128xbf16>
    %c0_10 = arith.constant 0 : index
    %c0_11 = arith.constant 0 : index
    %10 = vector.load %arg5[%c0_10, %c0_11] : memref<128x128xbf16, #tpu.memory_space<vmem>>, vector<128x128xbf16>
    %cst_12 = arith.constant dense<0.000000e+00> : vector<256x128xf32>
    %11 = tpu.matmul %9, %10, %cst_12 {dimension_numbers = #tpu.dot_dimension_numbers<[1], [0], [0], [1], [0, 0, 1, 1], [], []>} : vector<256x128xbf16>, vector<128x128xbf16>, vector<256x128xf32> -> vector<256x128xf32>
    %12 = arith.truncf %11 : vector<256x128xf32> to vector<256x128xbf16>
    %c0_13 = arith.constant 0 : index
    %c0_14 = arith.constant 0 : index
    %c0_15 = arith.constant 0 : index
    %13 = vector.load %arg7[%c0_13, %c0_14, %c0_15] : memref<1x256x128xbf16, #tpu.memory_space<vmem>>, vector<1x256x128xbf16>
    %14 = vector.shape_cast %13 : vector<1x256x128xbf16> to vector<256x128xbf16>
    %15 = vector.shape_cast %12 : vector<256x128xbf16> to vector<1x256x128xbf16>
    tpu.vector_store %arg7[%c0_13, %c0_14, %c0_15], %15 {strides = array<i32>} : memref<1x256x128xbf16, #tpu.memory_space<vmem>>, vector<1x256x128xbf16>,
    return
  }
  func.func @transform_0(%arg0: i32, %arg1: i32) -> (i32, i32, i32) {
    %c0_i32 = arith.constant 0 : i32
    %c0_i32_0 = arith.constant 0 : i32
    return %arg0, %arg1, %c0_i32 : i32, i32, i32
  }
  func.func @transform_1(%arg0: i32, %arg1: i32) -> (i32, i32, i32) {
    %c0_i32 = arith.constant 0 : i32
    %c0_i32_0 = arith.constant 0 : i32
    return %arg0, %arg1, %c0_i32 : i32, i32, i32
  }
  func.func @transform_2(%arg0: i32, %arg1: i32) -> (i32, i32) {
    %c0_i32 = arith.constant 0 : i32
    %c0_i32_0 = arith.constant 0 : i32
    %c0_i32_1 = arith.constant 0 : i32
    return %c0_i32, %c0_i32_0 : i32, i32
  }
  func.func @transform_3(%arg0: i32, %arg1: i32) -> (i32, i32) {
    %c0_i32 = arith.constant 0 : i32
    %c0_i32_0 = arith.constant 0 : i32
    %c0_i32_1 = arith.constant 0 : i32
    return %c0_i32, %c0_i32_0 : i32, i32
  }
  func.func @transform_4(%arg0: i32, %arg1: i32) -> (i32, i32, i32) {
    %c0_i32 = arith.constant 0 : i32
    %c0_i32_0 = arith.constant 0 : i32
    return %arg0, %arg1, %c0_i32 : i32, i32, i32
  }
  func.func @transform_5(%arg0: i32, %arg1: i32) -> (i32, i32, i32) {
    %c0_i32 = arith.constant 0 : i32
    %c0_i32_0 = arith.constant 0 : i32
    return %arg0, %arg1, %c0_i32 : i32, i32, i32
  }
}

</mosaic_0001>

<bundles_post_ra>
// kernel: tpu_custom_call.1
= control target key start
LH: loop header
LB: loop body
LE: loop exit
PB: predicated region body
PF: predicated region fallthrough
CT: control target
= control target key end

     0   :  { %s3036_s0 = inlined_call_operand.hbm [shape: bf16[2,512,128], index: 0, kind: input, shape index: {}]   ;;  %s3037_s1 = inlined_call_operand.hbm [shape: bf16[2,512,128], index: 1, kind: input, shape index: {}]   ;;  %s3038_s2 = inlined_call_operand.hbm [shape: bf16[128,128], index: 2, kind: input, shape index: {}]   ;;  %s3039_s3 = inlined_call_operand.hbm [shape: bf16[128,128], index: 3, kind: input, shape index: {}]   ;;  %s3040_s4 = inlined_call_operand.hbm [shape: bf16[2,512,128], index: 4, kind: output, shape index: {0}]   ;;  %s3041_s5 = inlined_call_operand.hbm [shape: bf16[2,512,128], index: 5, kind: output, shape index: {1}]  }
   0x1   :  { %3055 = sst [smem:[#allocation23_spill]] %s3038_s2 }
   0x2   :  { %3056 = sst [smem:[#allocation24_spill]] %s3039_s3 }
   0x3   :  { %3057 = sst [smem:[#allocation25_spill]] %s3041_s5 }
   0x4   :  { %11 = vsyncpa [#allocation3], 0 }
   0x5   :  { %13 = vsyncpa [#allocation3 + $0x1], 0 }
   0x6   :  { %14 = vsyncpa [#allocation6], 0 }
   0x7   :  { %16 = vsyncpa [#allocation6 + $0x1], 0 }
   0x8   :  { %17 = vsyncpa [#allocation9], 0 }
   0x9   :  { %18 = vsyncpa [#allocation4], 0 }
   0xa   :  { %20 = vsyncpa [#allocation4 + $0x1], 0 }
   0xb   :  { %21 = vsyncpa [#allocation12], 0 }
   0xc   :  { %23 = vsyncpa [#allocation12 + $0x1], 0  ;;  %s2589_s18 = smov 0   ;;  %s2591_s19 = smov 0  }
   0xd   :  { %s2593_s20 = smov 0   ;;  %s2595_s21 = smov 0  }
   0xe   :  { %s2597_s22 = smov 0   ;;  %s2599_s23 = smov 0  }
   0xf   :  { %s2601_s24 = smov 0   ;;  %s2603_s25 = smov 0  }
  0x10 LB: > { %3058 = sst [smem:[#allocation19_spill]] %s2519_s18  ;;  %s2630_s26 = sadd.s32 4294967295, %s2547_s25   ;;  %s2547_s25 = sphi %s2603_s25, %s29_s25   ;;  %s2543_s24 = sphi %s2601_s24, %s3092_s24   ;;  %s2539_s23 = sphi %s2599_s23, %s3091_s23   ;;  %s2535_s22 = sphi %s2597_s22, %s3090_s22   ;;  %s2531_s21 = sphi %s2595_s21, %s3089_s21   ;;  %s2527_s20 = sphi %s2593_s20, %s3088_s20   ;;  %s2523_s19 = sphi %s2591_s19, %s3087_s19   ;;  %s2519_s18 = sphi %s2589_s18, %s3086_s18  }
  0x11   : > { %s1588_s27 = sadd.s32 4294967294, %s2547_s25   ;;  %p63_p0 = scmp.ne.s32.totalorder %s2523_s19, %s2519_s18 }
  0x12   : > { %p3042_p1 = scmp.eq.s32.totalorder %s2630_s26, 0  ;;  %p165_p3 = scmp.eq.s32.totalorder %s1588_s27, 3 }
  0x13   : > { %p1589_p5 = scmp.ge.s32.totalorder %s2547_s25, 1  ;;  %p200_p7 = scmp.lt.s32.totalorder %s2547_s25, 5 }
  0x14   : > { %p2639_p4 = por %p3042_p1, %p63_p0  ;;  %p2644_p6 = por %p165_p3, %p63_p0 }
  0x15   : > { %p2649_p8 = pnand %p1589_p5, %p200_p7  ;;  %s2549_s6 = smov [#allocation7]  }
  0x16   : > { %s3059_s28 = scalar_select %p2639_p4, 1, 0 }
  0x17   : > { %s3060_s29 = scalar_select %p2644_p6, 1, 0 }
  0x18   : > { %s3062_s30 = scalar_select %p2649_p8, 1, 0 }
  0x19   : > { %3061 = sst [smem:[#allocation20_spill]] %s3060_s29  ;;  %s212_s7 = sshll.u32 %s2549_s6, 4  ;;  %s213_s7 = int_to_ptr.vmem [resolvable:$true] %s212_s7 }
  0x1a   : > { %p2144_p9 = pneg %p2649_p8  ;;  %s2550_s9 = smov [#allocation8]  }
  0x1b   : > { %s225_s10 = sshll.u32 %s2550_s9, 4  ;;  %s3064_s2 = sld [smem:[#allocation23_spill]]  ;;  %s2661_s10 = int_to_ptr.vmem [resolvable:$true] %s225_s10 }
  0x1c   : > { %p2657_p10 = pnand %p2144_p9, %p3042_p1 }
  0x1e   : > { %p2291_p12 = pneg %p2657_p10 }
  0x21   : > { %s2289_s13 = scalar_lea.hbm %s3064_s2, 1024 }
  0x22   : > { %p2290_p11 = scmp.ne.s32.totalorder %s3064_s2, %s2289_s13  ;;  %p2296_p3 = scmp.lt.u32.totalorder %s2289_s13, %s3064_s2 }
  0x24   : > { %p2292_p13 = pnand %p2291_p12, %p2290_p11 }
  0x26   : > { %p2293_p0 = pneg %p2292_p13 }
  0x28   : > { %p2298_p5 = pnand %p2296_p3, %p2293_p0 }
  0x2a   : > { %2301 = shalt.err (!%p2298_p5)
}
  0x2b   : > { %s2302_s27 = scalar_lea.vmem %s213_s7, 1024  ;;  %p2310_p2 = scmp.lt.s32.totalorder %s213_s7, %s213_s7 }
  0x2c   : > { %p2303_p7 = scmp.ne.s32.totalorder %s213_s7, %s2302_s27  ;;  %p2311_p6 = scmp.lt.s32.totalorder %s2302_s27, %s2302_s27 }
  0x2e   : > { %p2305_p9 = pnand %p2303_p7, %p2291_p12  ;;  %p2312_p4 = por %p2311_p6, %p2310_p2 }
  0x30   : > { %p2306_p1 = pneg %p2305_p9 }
  0x32   : > { %p2313_p8 = pnand %p2312_p4, %p2306_p1 }
  0x34   : > { %2316 = shalt.err (!%p2313_p8)
}
  0x35   : > { %s3046_s6 = smov 64   ;;  %s3048_s9 = smov 4  }
  0x36   : > { %2147 = dma.hbm_to_vmem [thread:$0]  (!%p2657_p10), %s3064_s2, 1024, %s213_s7, [#allocation6], %s3046_s6, %s3046_s6, %s3048_s9  }
  0x37   : > { %s3065_s3 = sld [smem:[#allocation24_spill]] }
  0x3d   : > { %s2317_s15 = scalar_lea.hbm %s3065_s3, 1024 }
  0x3e   : > { %p2318_p1 = scmp.ne.s32.totalorder %s3065_s3, %s2317_s15  ;;  %p2324_p6 = scmp.lt.u32.totalorder %s2317_s15, %s3065_s3 }
  0x40   : > { %p2320_p2 = pnand %p2318_p1, %p2291_p12 }
  0x42   : > { %p2321_p4 = pneg %p2320_p2 }
  0x44   : > { %p2326_p8 = pnand %p2324_p6, %p2321_p4 }
  0x46   : > { %2329 = shalt.err (!%p2326_p8)
}
  0x47   : > { %s2330_s7 = scalar_lea.vmem %s2661_s10, 1024  ;;  %p2338_p3 = scmp.lt.s32.totalorder %s2661_s10, %s2661_s10 }
  0x48   : > { %p2331_p11 = scmp.ne.s32.totalorder %s2661_s10, %s2330_s7  ;;  %p2339_p5 = scmp.lt.s32.totalorder %s2330_s7, %s2330_s7 }
  0x4a   : > { %p2333_p13 = pnand %p2331_p11, %p2291_p12  ;;  %p2340_p7 = por %p2339_p5, %p2338_p3 }
  0x4c   : > { %p2334_p0 = pneg %p2333_p13 }
  0x4e   : > { %p2341_p9 = pnand %p2340_p7, %p2334_p0 }
  0x50   : > { %2344 = shalt.err (!%p2341_p9)
}
  0x51   : > { %2150 = dma.hbm_to_vmem [thread:$0]  (!%p2657_p10), %s3065_s3, 1024, %s2661_s10, [#allocation9], %s3046_s6, %s3046_s6, %s3048_s9  }
  0x52   : > { %s38_s8 = sadd.s32 1, %s2539_s23  ;;  %s41_s12 = sadd.s32 1, %s2543_s24 }
  0x53   : > { %p39_p12 = scmp.ge.s32.totalorder %s38_s8, 2  ;;  %s50_s13 = sadd.s32 1, %s2527_s20 }
  0x54   : > { %p57_p1 = scmp.ne.s32.totalorder %s2527_s20, %s2523_s19  ;;  %p58_p2 = scmp.eq.s32.totalorder %s2547_s25, 0 }
  0x55   : > { %s3094_s8 = smov (%p39_p12, %s38_s8), 0  ;;  %s3096_s12 = smov (!%p39_p12, %s41_s12), %s2543_s24 }
  0x56   : > { %3066 = sst [smem:[#allocation21_spill]] %s3094_s8  ;;  %s46_s14 = ssub.s32 %s2539_s23, %s3094_s8 }
  0x57   : > { %p2727_p4 = por %p58_p2, %p57_p1  ;;  %p43_p10 = scmp.ge.s32.totalorder %s3096_s12, 2 }
  0x58   : > { %p3068_p6 = scmp.eq.s32.totalorder %s2630_s26, 3  ;;  %p2167_p11 = scmp.lt.s32.totalorder %s2547_s25, 4 }
  0x59   : > { %s239_s16 = sand.u32 1, %s2527_s20   ;;  %s3098_s12 = smov (%p43_p10, %s3096_s12), 0 }
  0x5a   : > { %p2733_p8 = por %p3068_p6, %p57_p1  ;;  %s1593_s17 = sshll.u32 %s239_s16, 7 }
  0x5b   : > { %s45_s27 = ssub.s32 %s2543_s24, %s3098_s12  ;;  %s1594_s29 = sshll.u32 %s2539_s23, 5 }
  0x5c   : > { %s3069_s10 = scalar_select %p2733_p8, 1, 0 }
  0x5d   : > { %s47_s7 = sor.u32 %s46_s14, %s45_s27  ;;  %s1595_s11 = sshll.u32 %s2543_s24, 6 }
  0x5e   : > { %3070 = sst [smem:[#allocation22_spill]] %s3069_s10  ;;  %p48_p13 = scmp.eq.s32.totalorder %s47_s7, 0 }
  0x5f   : > { %s249_s6 = sadd.s32 %s1595_s11, %s1594_s29  ;;  %s243_s9 = scalar_lea.vmem [#allocation2], %s1593_s17 }
  0x60   : > { %s252_s2 = sshll.u32 %s243_s9, 4  ;;  %s1596_s8 = sshll.u32 %s249_s6, 6  ;;  %s2748_s2 = int_to_ptr.vmem [resolvable:$true] %s252_s2 }
  0x61   : > { %s2746_s3 = scalar_select %p48_p13, %s2527_s20, %s50_s13  }
  0x62   : > { %s2753_s10 = scalar_lea.hbm %s3036_s0, %s1596_s8  ;;  %p2759_p0 = pnand %p2167_p11, %p2727_p4 }
  0x63   : > { %s2766_s6 = scalar_lea.hbm %s3037_s1, %s1596_s8  ;;  %s266_s5 = scalar_lea.vmem [#allocation5], %s1593_s17 }
  0x64   : > { %s2768_s18 = sshll.u32 %s266_s5, 4  ;;  %s2770_s15 = scalar_lea.sflag [#allocation3], %s239_s16  ;;  %s2802_s18 = int_to_ptr.vmem [resolvable:$true] %s2768_s18 }
  0x65   : > { %s2345_s27 = scalar_lea.hbm %s2753_s10, 2048  ;;  %p2347_p5 = pneg %p2759_p0 }
  0x66   : > { %p2346_p3 = scmp.ne.s32.totalorder %s2753_s10, %s2345_s27  ;;  %s2350_s11 = scalar_lea.hbm %s3036_s0, 8192 }
  0x67   : > { %p2351_p12 = scmp.lt.u32.totalorder %s2753_s10, %s3036_s0  ;;  %p2352_p1 = scmp.lt.u32.totalorder %s2350_s11, %s2345_s27 }
  0x68   : > { %p2348_p7 = pnand %p2347_p5, %p2346_p3  ;;  %p2354_p4 = scmp.lt.u32.totalorder %s2345_s27, %s2753_s10 }
  0x69   : > { %p2353_p2 = por %p2352_p1, %p2351_p12 }
  0x6a   : > { %p2349_p9 = pneg %p2348_p7 }
  0x6b   : > { %p2355_p10 = por %p2354_p4, %p2353_p2 }
  0x6d   : > { %p2356_p6 = pnand %p2355_p10, %p2349_p9 }
  0x6f   : > { %2359 = shalt.err (!%p2356_p6)
}
  0x70   : > { %s2360_s16 = scalar_lea.vmem %s2748_s2, 2048  ;;  %s2553_s17 = smov [#allocation2]  }
  0x71   : > { %p2361_p11 = scmp.ne.s32.totalorder %s2748_s2, %s2360_s16  ;;  %s2365_s13 = sshll.u32 %s2553_s17, 4  ;;  %s2366_s13 = int_to_ptr.vmem [resolvable:$false] %s2365_s13 }
  0x72   : > { %s2367_s5 = scalar_lea.vmem %s2366_s13, 4096  ;;  %p2368_p7 = scmp.lt.s32.totalorder %s2748_s2, %s2366_s13 }
  0x73   : > { %p2363_p13 = pnand %p2361_p11, %p2347_p5  ;;  %p2369_p12 = scmp.lt.s32.totalorder %s2367_s5, %s2360_s16 }
  0x75   : > { %p2364_p3 = pneg %p2363_p13  ;;  %p2370_p1 = por %p2369_p12, %p2368_p7 }
  0x77   : > { %p2371_p2 = pnand %p2370_p1, %p2364_p3 }
  0x79   : > { %2374 = shalt.err (!%p2371_p2)
}
  0x7a   : > { %s3072_s27 = smov 4   ;;  %s3073_s7 = smov 64  }
  0x7b   : > { %2154 = dma.hbm_to_vmem [thread:$0]  (!%p2759_p0), %s2753_s10, 2048, %s2748_s2, %s2770_s15, %s3073_s7, %s3073_s7, %s3072_s27  }
  0x7c   : > { %s262_s29 = sand.u32 1, %s2547_s25   ;;  %s2375_s9 = scalar_lea.hbm %s2766_s6, 2048 }
  0x7d   : > { %s2805_s11 = scalar_lea.sflag [#allocation6], %s262_s29  ;;  %p2376_p9 = scmp.ne.s32.totalorder %s2766_s6, %s2375_s9 }
  0x7e   : > { %s2380_s17 = scalar_lea.hbm %s3037_s1, 8192  ;;  %p2381_p6 = scmp.lt.u32.totalorder %s2766_s6, %s3037_s1 }
  0x7f   : > { %p2378_p4 = pnand %p2376_p9, %p2347_p5  ;;  %p2382_p11 = scmp.lt.u32.totalorder %s2380_s17, %s2375_s9 }
  0x80   : > { %p2384_p3 = scmp.lt.u32.totalorder %s2375_s9, %s2766_s6 }
  0x81   : > { %p2379_p10 = pneg %p2378_p4  ;;  %p2383_p13 = por %p2382_p11, %p2381_p6 }
  0x83   : > { %p2385_p7 = por %p2384_p3, %p2383_p13 }
  0x85   : > { %p2386_p12 = pnand %p2385_p7, %p2379_p10 }
  0x87   : > { %2389 = shalt.err (!%p2386_p12)
}
  0x88   : > { %s2390_s2 = scalar_lea.vmem %s2802_s18, 2048  ;;  %s2554_s10 = smov [#allocation5]  }
  0x89   : > { %p2391_p1 = scmp.ne.s32.totalorder %s2802_s18, %s2390_s2  ;;  %s2395_s15 = sshll.u32 %s2554_s10, 4  ;;  %s2396_s15 = int_to_ptr.vmem [resolvable:$false] %s2395_s15 }
  0x8a   : > { %s2397_s29 = scalar_lea.vmem %s2396_s15, 4096  ;;  %p2398_p4 = scmp.lt.s32.totalorder %s2802_s18, %s2396_s15 }
  0x8b   : > { %p2393_p2 = pnand %p2391_p1, %p2347_p5  ;;  %p2399_p6 = scmp.lt.s32.totalorder %s2397_s29, %s2390_s2 }
  0x8d   : > { %p2394_p9 = pneg %p2393_p2  ;;  %p2400_p11 = por %p2399_p6, %p2398_p4 }
  0x8f   : > { %p2401_p13 = pnand %p2400_p11, %p2394_p9 }
  0x91   : > { %2404 = shalt.err (!%p2401_p13)
}
  0x92   : > { %2157 = dma.hbm_to_vmem [thread:$0]  (!%p2759_p0), %s2766_s6, 2048, %s2802_s18, %s2805_s11, %s3073_s7, %s3073_s7, %s3072_s27  }
  0x93   : > { %p3074_p5 = scmp.ne.s32.totalorder %s3062_s30, 0 }
  0x94   : > { %s2837_s9 = sand.u32 (!%p3074_p5), 1, %s2523_s19   ;;  %p3075_p10 = scmp.ne.s32.totalorder (!%p3074_p5), %s3059_s28, 0 }
  0x95   : > { %287 = sbr.rel (%p3074_p5) target bundleno = 511 (0x1ff), region = 36  ;;  %s2840_s8 = sshll.u32 (!%p3074_p5), %s2837_s9, 7 }
  0x96   : > { %s290_s14 = scalar_lea.sflag (!%p3074_p5), [#allocation3], %s2837_s9  ;;  %s2844_s16 = scalar_lea.vmem (!%p3074_p5), [#allocation2], %s2840_s8 }
  0x9c   : > { %2494 = dma.done.wait (%p3075_p10), %s290_s14, 2048  }
  0x9d   : > { %2496 = vsyncadd (%p3075_p10), %s290_s14, 4294965248  ;;  %s298_s30 = sand.u32 1, %s2630_s26   ;;  %s2852_s18 = scalar_lea.vmem [#allocation5], %s2840_s8 }
  0x9e   : > { %s299_s6 = scalar_lea.sflag [#allocation6], %s298_s30 }
  0x9f   : > { %2498 = dma.done.wait (%p3075_p10), %s299_s6, 2048  }
  0xa0   : > { %2500 = vsyncadd (%p3075_p10), %s299_s6, 4294965248  ;;  %p3076_p0 = scmp.eq.s32.totalorder %s2630_s26, 0 }
  0xa2   : > { %2502 = dma.done.wait (%p3076_p0), [#allocation6], 1024   ;;  %p3077_p3 = pmov %p3076_p0 }
  0xa3   : > { %p3078_p7 = pmov %p3076_p0 }
  0xa4   : > { %2504 = vsyncadd (%p3077_p3), [#allocation6], 4294966272 }
  0xa5   : > { %2506 = dma.done.wait (%p3078_p7), [#allocation9], 1024   ;;  %p3079_p12 = pmov %p3076_p0 }
  0xa6   : > { %v2241_v0 = vld [vmem:[#allocation7] sm:$0xff]   ;;  %v2243_v2 = vld [vmem:[#allocation7 + $0x8] sm:$0xff]   ;;  %v2245_v4 = vld [vmem:[#allocation7 + $0x10] sm:$0xff]   ;;  %s2899_s26 = scalar_lea.vmem [#allocation10], %s2840_s8  ;;  %s2903_s28 = scalar_lea.vmem [#allocation11], %s2840_s8 }
  0xa7   : > { %2508 = vsyncadd (%p3079_p12), [#allocation9], 4294966272  ;;  %v2242_v1 = vld [vmem:[#allocation8] sm:$0xff]   ;;  %2032 = vmatprep.subr.bf16.mxu0 %v2241_v0  ;;  %v2244_v3 = vld [vmem:[#allocation8 + $0x8] sm:$0xff]   ;;  %s1722_s27 = sshll.u32 %s2531_s21, 5  ;;  %s1723_s7 = sshll.u32 %s2535_s22, 6 }
  0xa8   : > { %2080 = vmatprep.subr.bf16.mxu1 %v2242_v1  ;;  %2033 = vmatpush3.bf16.msra.mxu0 %v2241_v0  ;;  %v2246_v5 = vld [vmem:[#allocation8 + $0x10] sm:$0xff]   ;;  %v2247_v6 = vld [vmem:[#allocation7 + $0x18] sm:$0xff]   ;;  %v2249_v8 = vld [vmem:[#allocation7 + $0x20] sm:$0xff]   ;;  %s1396_s11 = sadd.s32 %s1723_s7, %s1722_s27  ;;  %s1399_s21 = sshll.u32 %s2899_s26, 4  ;;  %s2941_s21 = int_to_ptr.vmem [resolvable:$true] %s1399_s21 }
  0xa9   : > { %2081 = vmatpush3.bf16.msra.mxu1 %v2242_v1  ;;  %2034 = vmatprep.subr.bf16.mxu0 %v2243_v2  ;;  %v2248_v7 = vld [vmem:[#allocation8 + $0x18] sm:$0xff]   ;;  %v2250_v9 = vld [vmem:[#allocation8 + $0x20] sm:$0xff]   ;;  %v2251_v10 = vld [vmem:[#allocation7 + $0x28] sm:$0xff]   ;;  %s1724_s17 = sshll.u32 %s1396_s11, 6  ;;  %s1417_s2 = sshll.u32 %s2903_s28, 4  ;;  %s2949_s2 = int_to_ptr.vmem [resolvable:$true] %s1417_s2 }
  0xaa   : > { %2082 = vmatprep.subr.bf16.mxu1 %v2244_v3  ;;  %v2252_v11 = vld [vmem:[#allocation8 + $0x28] sm:$0xff]   ;;  %v2257_v12 = vld [vmem:[%s2844_s16] sm:$0xff]   ;;  %v2253_v14 = vld [vmem:[#allocation7 + $0x30] sm:$0xff]   ;;  %s2938_s5 = scalar_lea.hbm %s3040_s4, %s1724_s17  ;;  %s3081_s8 = sld [smem:[#allocation25_spill]] }
  0xab   : > { %v2258_v13 = vld [vmem:[%s2852_s18] sm:$0xff]   ;;  %2048 = vmatprep.mubr.bf16.mxu0 %v2257_v12  ;;  %v2254_v15 = vld [vmem:[#allocation8 + $0x30] sm:$0xff]   ;;  %v2255_v16 = vld [vmem:[#allocation7 + $0x38] sm:$0xff]   ;;  %s2405_s30 = scalar_lea.vmem %s2941_s21, 2048  ;;  %s2555_s6 = smov [#allocation10]  }
  0xac   : > { %2035 = vmatpush3.bf16.msra.mxu0 %v2243_v2  ;;  %2096 = vmatprep.mubr.bf16.mxu1 %v2258_v13  ;;  %v2256_v17 = vld [vmem:[#allocation8 + $0x38] sm:$0xff]   ;;  %v2259_v18 = vld [vmem:[%s2844_s16 + $0x8] sm:$0xff]   ;;  %v2261_v20 = vld [vmem:[%s2844_s16 + $0x10] sm:$0xff]   ;;  %p2406_p1 = scmp.ne.s32.totalorder %s2941_s21, %s2405_s30 }
  0xad   : > { %2083 = vmatpush3.bf16.msra.mxu1 %v2244_v3  ;;  %2036 = vmatprep.subr.bf16.mxu0 %v2245_v4  ;;  %v2260_v19 = vld [vmem:[%s2852_s18 + $0x8] sm:$0xff]   ;;  %v2262_v21 = vld [vmem:[%s2852_s18 + $0x10] sm:$0xff]   ;;  %v2263_v22 = vld [vmem:[%s2844_s16 + $0x18] sm:$0xff]  }
  0xae   : > { %2084 = vmatprep.subr.bf16.mxu1 %v2246_v5  ;;  %v2264_v23 = vld [vmem:[%s2852_s18 + $0x18] sm:$0xff]   ;;  %v2265_v24 = vld [vmem:[%s2844_s16 + $0x20] sm:$0xff]   ;;  %v2267_v26 = vld [vmem:[%s2844_s16 + $0x28] sm:$0xff]   ;;  %p2407_p2 = pnand %p2406_p1, %p2733_p8 }
  0xaf   : > { %v2266_v25 = vld [vmem:[%s2852_s18 + $0x20] sm:$0xff]   ;;  %v2268_v27 = vld [vmem:[%s2852_s18 + $0x28] sm:$0xff]   ;;  %v2269_v28 = vld [vmem:[%s2844_s16 + $0x30] sm:$0xff]  }
  0xb0   : > { %2037 = vmatpush3.bf16.msra.mxu0 %v2245_v4  ;;  %v2270_v29 = vld [vmem:[%s2852_s18 + $0x30] sm:$0xff]   ;;  %v2271_v30 = vld [vmem:[%s2844_s16 + $0x38] sm:$0xff]   ;;  %v2273_v32 = vld [vmem:[%s2844_s16 + $0x40] sm:$0xff]   ;;  %s2947_s14 = scalar_lea.hbm %s3081_s8, %s1724_s17  ;;  %p2408_p9 = pneg %p2407_p2 }
  0xb1   : > { %2085 = vmatpush3.bf16.msra.mxu1 %v2246_v5  ;;  %2038 = vmatprep.subr.bf16.mxu0 %v2247_v6  ;;  %v2272_v31 = vld [vmem:[%s2852_s18 + $0x38] sm:$0xff]   ;;  %v2274_v33 = vld [vmem:[%s2852_s18 + $0x40] sm:$0xff]   ;;  %v2275_v34 = vld [vmem:[%s2844_s16 + $0x48] sm:$0xff]  }
  0xb2   : > { %2086 = vmatprep.subr.bf16.mxu1 %v2248_v7  ;;  %v2276_v35 = vld [vmem:[%s2852_s18 + $0x48] sm:$0xff]   ;;  %v2277_v36 = vld [vmem:[%s2844_s16 + $0x50] sm:$0xff]   ;;  %v2279_v38 = vld [vmem:[%s2844_s16 + $0x58] sm:$0xff]  }
  0xb3   : > { %v2278_v37 = vld [vmem:[%s2852_s18 + $0x50] sm:$0xff]   ;;  %v2280_v39 = vld [vmem:[%s2852_s18 + $0x58] sm:$0xff]   ;;  %v2281_v40 = vld [vmem:[%s2844_s16 + $0x60] sm:$0xff]  }
  0xb4   : > { %2039 = vmatpush3.bf16.msra.mxu0 %v2247_v6  ;;  %v2282_v41 = vld [vmem:[%s2852_s18 + $0x60] sm:$0xff]   ;;  %v2283_v42 = vld [vmem:[%s2844_s16 + $0x68] sm:$0xff]   ;;  %v2285_v44 = vld [vmem:[%s2844_s16 + $0x70] sm:$0xff]  }
  0xb5   : > { %2087 = vmatpush3.bf16.msra.mxu1 %v2248_v7  ;;  %2040 = vmatprep.subr.bf16.mxu0 %v2249_v8  ;;  %v2284_v43 = vld [vmem:[%s2852_s18 + $0x68] sm:$0xff]   ;;  %v2286_v45 = vld [vmem:[%s2852_s18 + $0x70] sm:$0xff]   ;;  %v2287_v46 = vld [vmem:[%s2844_s16 + $0x78] sm:$0xff]   ;;  %s1379_s16 = scalar_lea.sflag [#allocation4], %s2837_s9 }
  0xb6   : > { %2088 = vmatprep.subr.bf16.mxu1 %v2250_v9  ;;  %v2288_v47 = vld [vmem:[%s2852_s18 + $0x78] sm:$0xff]   ;;  %s2409_s18 = sshll.u32 %s2555_s6, 4  ;;  %s2410_s18 = int_to_ptr.vmem [resolvable:$false] %s2409_s18 }
  0xb7   : > { %s2411_s27 = scalar_lea.vmem %s2410_s18, 4096  ;;  %p2412_p4 = scmp.lt.s32.totalorder %s2941_s21, %s2410_s18 }
  0xb8   : > { %2041 = vmatpush3.bf16.msra.mxu0 %v2249_v8  ;;  %p2413_p6 = scmp.lt.s32.totalorder %s2411_s27, %s2405_s30 }
  0xb9   : > { %2089 = vmatpush3.bf16.msra.mxu1 %v2250_v9  ;;  %2042 = vmatprep.subr.bf16.mxu0 %v2251_v10 }
  0xba   : > { %2090 = vmatprep.subr.bf16.mxu1 %v2252_v11  ;;  %p2414_p11 = por %p2413_p6, %p2412_p4 }
  0xbc   : > { %2043 = vmatpush3.bf16.msra.mxu0 %v2251_v10  ;;  %p2415_p13 = pnand %p2414_p11, %p2408_p9 }
  0xbd   : > { %2091 = vmatpush3.bf16.msra.mxu1 %v2252_v11  ;;  %2044 = vmatprep.subr.bf16.mxu0 %v2253_v14 }
  0xbe   : > { %2092 = vmatprep.subr.bf16.mxu1 %v2254_v15 }
  0xc0   : > { %2045 = vmatpush3.bf16.msra.mxu0 %v2253_v14 }
  0xc1   : > { %2093 = vmatpush3.bf16.msra.mxu1 %v2254_v15  ;;  %2046 = vmatprep.subr.bf16.mxu0 %v2255_v16 }
  0xc2   : > { %2094 = vmatprep.subr.bf16.mxu1 %v2256_v17 }
  0xc4   : > { %2047 = vmatpush3.bf16.msra.mxu0 %v2255_v16 }
  0xc5   : > { %2095 = vmatpush3.bf16.msra.mxu1 %v2256_v17 }
  0xc7   : > { %2049 = vmatmul.mubr.bf16.vlgmr.msra.gmra.mrb[0].mxu0 %v2259_v18 }
  0xc8   : > { %2097 = vmatmul.mubr.bf16.vlgmr.msra.gmra.mrb[0].mxu1 %v2260_v19  ;;  %2052 = vmatprep.mubr.bf16.mxu0 %v2261_v20 }
  0xc9   : > { %2100 = vmatprep.mubr.bf16.mxu1 %v2262_v21 }
  0xcf   : > { %2053 = vmatmul.mubr.bf16.gmra.mrb[4].mxu0 %v2263_v22 }
  0xd0   : > { %2101 = vmatmul.mubr.bf16.gmra.mrb[4].mxu1 %v2264_v23  ;;  %2056 = vmatprep.mubr.bf16.mxu0 %v2265_v24 }
  0xd1   : > { %2104 = vmatprep.mubr.bf16.mxu1 %v2266_v25 }
  0xd7   : > { %2057 = vmatmul.mubr.bf16.gmra.mrb[8].mxu0 %v2267_v26 }
  0xd8   : > { %2105 = vmatmul.mubr.bf16.gmra.mrb[8].mxu1 %v2268_v27  ;;  %2060 = vmatprep.mubr.bf16.mxu0 %v2269_v28 }
  0xd9   : > { %2108 = vmatprep.mubr.bf16.mxu1 %v2270_v29 }
  0xdf   : > { %2061 = vmatmul.mubr.bf16.gmra.mrb[12].mxu0 %v2271_v30 }
  0xe0   : > { %2109 = vmatmul.mubr.bf16.gmra.mrb[12].mxu1 %v2272_v31  ;;  %2064 = vmatprep.mubr.bf16.mxu0 %v2273_v32 }
  0xe1   : > { %2112 = vmatprep.mubr.bf16.mxu1 %v2274_v33 }
  0xe7   : > { %2065 = vmatmul.mubr.bf16.gmra.mrb[16].mxu0 %v2275_v34 }
  0xe8   : > { %2113 = vmatmul.mubr.bf16.gmra.mrb[16].mxu1 %v2276_v35  ;;  %2068 = vmatprep.mubr.bf16.mxu0 %v2277_v36 }
  0xe9   : > { %2116 = vmatprep.mubr.bf16.mxu1 %v2278_v37 }
  0xef   : > { %2069 = vmatmul.mubr.bf16.gmra.mrb[20].mxu0 %v2279_v38 }
  0xf0   : > { %2117 = vmatmul.mubr.bf16.gmra.mrb[20].mxu1 %v2280_v39  ;;  %2072 = vmatprep.mubr.bf16.mxu0 %v2281_v40 }
  0xf1   : > { %2120 = vmatprep.mubr.bf16.mxu1 %v2282_v41 }
  0xf7   : > { %2073 = vmatmul.mubr.bf16.gmra.mrb[24].mxu0 %v2283_v42 }
  0xf8   : > { %2121 = vmatmul.mubr.bf16.gmra.mrb[24].mxu1 %v2284_v43  ;;  %2076 = vmatprep.mubr.bf16.mxu0 %v2285_v44 }
  0xf9   : > { %2124 = vmatprep.mubr.bf16.mxu1 %v2286_v45 }
  0xff   : > { %2077 = vmatmul.mubr.bf16.gmra.mrb[28].mxu0 %v2287_v46 }
 0x100   : > { %2125 = vmatmul.mubr.bf16.gmra.mrb[28].mxu1 %v2288_v47 }
 0x19a   : > { %v2050_v48 = vpop.f32.mrb[0].mxu0 }
 0x19b   : > { %v2098_v49 = vpop.f32.mrb[0].mxu1  ;;  %v578_v50 = vpop.f32.mrb[1].mxu0 }
 0x19c   : > { %v1091_v51 = vpop.f32.mrb[1].mxu1  ;;  %v2051_v52 = vpop.f32.mrb[2].mxu0 }
 0x19d   : > { %v1802_v53 = vpack.c.bf16 %v2051_v52, %v2050_v48  ;;  %v2099_v54 = vpop.f32.mrb[2].mxu1  ;;  %v581_v55 = vpop.f32.mrb[3].mxu0 }
 0x19e   : > { %v1882_v56 = vpack.c.bf16 %v2099_v54, %v2098_v49  ;;  %v1797_v57 = vpack.c.bf16 %v581_v55, %v578_v50  ;;  %v1094_v58 = vpop.f32.mrb[3].mxu1 }
 0x19f   : > { %1954 = vst [vmem:[%s2899_s26 + $0x8] sm:$0xff] %v1802_v53   ;;  %v1877_v59 = vpack.c.bf16 %v1094_v58, %v1091_v51 }
 0x1a0   : > { %1969 = vst [vmem:[%s2903_s28 + $0x8] sm:$0xff] %v1882_v56   ;;  %1798 = vst [vmem:[%s2899_s26] sm:$0xff] %v1797_v57  }
 0x1a1   : > { %1878 = vst [vmem:[%s2903_s28] sm:$0xff] %v1877_v59  }
 0x1a2   : > { %v2054_v60 = vpop.f32.mrb[4].mxu0 }
 0x1a3   : > { %v2102_v61 = vpop.f32.mrb[4].mxu1  ;;  %v594_v62 = vpop.f32.mrb[5].mxu0 }
 0x1a4   : > { %v1107_v63 = vpop.f32.mrb[5].mxu1  ;;  %v2055_v0 = vpop.f32.mrb[6].mxu0 }
 0x1a5   : > { %v1812_v1 = vpack.c.bf16 %v2055_v0, %v2054_v60  ;;  %v2103_v2 = vpop.f32.mrb[6].mxu1  ;;  %v597_v3 = vpop.f32.mrb[7].mxu0 }
 0x1a6   : > { %v1892_v4 = vpack.c.bf16 %v2103_v2, %v2102_v61  ;;  %v1807_v5 = vpack.c.bf16 %v597_v3, %v594_v62  ;;  %v1110_v6 = vpop.f32.mrb[7].mxu1 }
 0x1a7   : > { %1956 = vst [vmem:[%s2899_s26 + $0x18] sm:$0xff] %v1812_v1   ;;  %v1887_v7 = vpack.c.bf16 %v1110_v6, %v1107_v63 }
 0x1a8   : > { %1971 = vst [vmem:[%s2903_s28 + $0x18] sm:$0xff] %v1892_v4   ;;  %1955 = vst [vmem:[%s2899_s26 + $0x10] sm:$0xff] %v1807_v5  }
 0x1a9   : > { %1970 = vst [vmem:[%s2903_s28 + $0x10] sm:$0xff] %v1887_v7  }
 0x1aa   : > { %v2058_v8 = vpop.f32.mrb[8].mxu0 }
 0x1ab   : > { %v2106_v9 = vpop.f32.mrb[8].mxu1  ;;  %v610_v10 = vpop.f32.mrb[9].mxu0 }
 0x1ac   : > { %v1123_v11 = vpop.f32.mrb[9].mxu1  ;;  %v2059_v12 = vpop.f32.mrb[10].mxu0 }
 0x1ad   : > { %v1822_v13 = vpack.c.bf16 %v2059_v12, %v2058_v8  ;;  %v2107_v14 = vpop.f32.mrb[10].mxu1  ;;  %v613_v15 = vpop.f32.mrb[11].mxu0 }
 0x1ae   : > { %v1902_v16 = vpack.c.bf16 %v2107_v14, %v2106_v9  ;;  %v1817_v17 = vpack.c.bf16 %v613_v15, %v610_v10  ;;  %v1126_v18 = vpop.f32.mrb[11].mxu1 }
 0x1af   : > { %1958 = vst [vmem:[%s2899_s26 + $0x28] sm:$0xff] %v1822_v13   ;;  %v1897_v19 = vpack.c.bf16 %v1126_v18, %v1123_v11 }
 0x1b0   : > { %1973 = vst [vmem:[%s2903_s28 + $0x28] sm:$0xff] %v1902_v16   ;;  %1957 = vst [vmem:[%s2899_s26 + $0x20] sm:$0xff] %v1817_v17  }
 0x1b1   : > { %1972 = vst [vmem:[%s2903_s28 + $0x20] sm:$0xff] %v1897_v19  }
 0x1b2   : > { %v2062_v20 = vpop.f32.mrb[12].mxu0 }
 0x1b3   : > { %v2110_v21 = vpop.f32.mrb[12].mxu1  ;;  %v626_v22 = vpop.f32.mrb[13].mxu0 }
 0x1b4   : > { %v1139_v23 = vpop.f32.mrb[13].mxu1  ;;  %v2063_v24 = vpop.f32.mrb[14].mxu0 }
 0x1b5   : > { %v1832_v25 = vpack.c.bf16 %v2063_v24, %v2062_v20  ;;  %v2111_v26 = vpop.f32.mrb[14].mxu1  ;;  %v629_v27 = vpop.f32.mrb[15].mxu0 }
 0x1b6   : > { %v1912_v28 = vpack.c.bf16 %v2111_v26, %v2110_v21  ;;  %v1827_v29 = vpack.c.bf16 %v629_v27, %v626_v22  ;;  %v1142_v30 = vpop.f32.mrb[15].mxu1 }
 0x1b7   : > { %1960 = vst [vmem:[%s2899_s26 + $0x38] sm:$0xff] %v1832_v25   ;;  %v1907_v31 = vpack.c.bf16 %v1142_v30, %v1139_v23 }
 0x1b8   : > { %1975 = vst [vmem:[%s2903_s28 + $0x38] sm:$0xff] %v1912_v28   ;;  %1959 = vst [vmem:[%s2899_s26 + $0x30] sm:$0xff] %v1827_v29  }
 0x1b9   : > { %1974 = vst [vmem:[%s2903_s28 + $0x30] sm:$0xff] %v1907_v31  }
 0x1ba   : > { %v2066_v32 = vpop.f32.mrb[16].mxu0 }
 0x1bb   : > { %v2114_v33 = vpop.f32.mrb[16].mxu1  ;;  %v642_v34 = vpop.f32.mrb[17].mxu0 }
 0x1bc   : > { %v1155_v35 = vpop.f32.mrb[17].mxu1  ;;  %v2067_v36 = vpop.f32.mrb[18].mxu0 }
 0x1bd   : > { %v1842_v37 = vpack.c.bf16 %v2067_v36, %v2066_v32  ;;  %v2115_v38 = vpop.f32.mrb[18].mxu1  ;;  %v645_v39 = vpop.f32.mrb[19].mxu0 }
 0x1be   : > { %v1922_v40 = vpack.c.bf16 %v2115_v38, %v2114_v33  ;;  %v1837_v41 = vpack.c.bf16 %v645_v39, %v642_v34  ;;  %v1158_v42 = vpop.f32.mrb[19].mxu1 }
 0x1bf   : > { %1962 = vst [vmem:[%s2899_s26 + $0x48] sm:$0xff] %v1842_v37   ;;  %v1917_v43 = vpack.c.bf16 %v1158_v42, %v1155_v35 }
 0x1c0   : > { %1977 = vst [vmem:[%s2903_s28 + $0x48] sm:$0xff] %v1922_v40   ;;  %1961 = vst [vmem:[%s2899_s26 + $0x40] sm:$0xff] %v1837_v41  }
 0x1c1   : > { %1976 = vst [vmem:[%s2903_s28 + $0x40] sm:$0xff] %v1917_v43  }
 0x1c2   : > { %v2070_v44 = vpop.f32.mrb[20].mxu0 }
 0x1c3   : > { %v2118_v45 = vpop.f32.mrb[20].mxu1  ;;  %v658_v46 = vpop.f32.mrb[21].mxu0 }
 0x1c4   : > { %v1171_v47 = vpop.f32.mrb[21].mxu1  ;;  %v2071_v48 = vpop.f32.mrb[22].mxu0 }
 0x1c5   : > { %v1852_v49 = vpack.c.bf16 %v2071_v48, %v2070_v44  ;;  %v2119_v50 = vpop.f32.mrb[22].mxu1  ;;  %v661_v51 = vpop.f32.mrb[23].mxu0 }
 0x1c6   : > { %v1932_v52 = vpack.c.bf16 %v2119_v50, %v2118_v45  ;;  %v1847_v53 = vpack.c.bf16 %v661_v51, %v658_v46  ;;  %v1174_v54 = vpop.f32.mrb[23].mxu1 }
 0x1c7   : > { %1964 = vst [vmem:[%s2899_s26 + $0x58] sm:$0xff] %v1852_v49   ;;  %v1927_v55 = vpack.c.bf16 %v1174_v54, %v1171_v47 }
 0x1c8   : > { %1979 = vst [vmem:[%s2903_s28 + $0x58] sm:$0xff] %v1932_v52   ;;  %1963 = vst [vmem:[%s2899_s26 + $0x50] sm:$0xff] %v1847_v53  }
 0x1c9   : > { %1978 = vst [vmem:[%s2903_s28 + $0x50] sm:$0xff] %v1927_v55  }
 0x1ca   : > { %v2074_v56 = vpop.f32.mrb[24].mxu0 }
 0x1cb   : > { %v2122_v57 = vpop.f32.mrb[24].mxu1  ;;  %v674_v58 = vpop.f32.mrb[25].mxu0 }
 0x1cc   : > { %v1187_v59 = vpop.f32.mrb[25].mxu1  ;;  %v2075_v60 = vpop.f32.mrb[26].mxu0 }
 0x1cd   : > { %v1862_v61 = vpack.c.bf16 %v2075_v60, %v2074_v56  ;;  %v2123_v62 = vpop.f32.mrb[26].mxu1  ;;  %v677_v63 = vpop.f32.mrb[27].mxu0 }
 0x1ce   : > { %v1942_v0 = vpack.c.bf16 %v2123_v62, %v2122_v57  ;;  %v1857_v1 = vpack.c.bf16 %v677_v63, %v674_v58  ;;  %v1190_v2 = vpop.f32.mrb[27].mxu1 }
 0x1cf   : > { %1966 = vst [vmem:[%s2899_s26 + $0x68] sm:$0xff] %v1862_v61   ;;  %v1937_v3 = vpack.c.bf16 %v1190_v2, %v1187_v59 }
 0x1d0   : > { %1981 = vst [vmem:[%s2903_s28 + $0x68] sm:$0xff] %v1942_v0   ;;  %1965 = vst [vmem:[%s2899_s26 + $0x60] sm:$0xff] %v1857_v1  }
 0x1d1   : > { %1980 = vst [vmem:[%s2903_s28 + $0x60] sm:$0xff] %v1937_v3  }
 0x1d2   : > { %v2078_v4 = vpop.f32.mrb[28].mxu0 }
 0x1d3   : > { %v2126_v5 = vpop.f32.mrb[28].mxu1  ;;  %v690_v6 = vpop.f32.mrb[29].mxu0 }
 0x1d4   : > { %v1203_v7 = vpop.f32.mrb[29].mxu1  ;;  %v2079_v8 = vpop.f32.mrb[30].mxu0 }
 0x1d5   : > { %v1872_v9 = vpack.c.bf16 %v2079_v8, %v2078_v4  ;;  %v2127_v10 = vpop.f32.mrb[30].mxu1  ;;  %v693_v11 = vpop.f32.mrb[31].mxu0 }
 0x1d6   : > { %v1952_v12 = vpack.c.bf16 %v2127_v10, %v2126_v5  ;;  %v1867_v13 = vpack.c.bf16 %v693_v11, %v690_v6  ;;  %v1206_v14 = vpop.f32.mrb[31].mxu1 }
 0x1d7   : > { %1968 = vst [vmem:[%s2899_s26 + $0x78] sm:$0xff] %v1872_v9   ;;  %v1947_v15 = vpack.c.bf16 %v1206_v14, %v1203_v7 }
 0x1d8   : > { %1983 = vst [vmem:[%s2903_s28 + $0x78] sm:$0xff] %v1952_v12   ;;  %1967 = vst [vmem:[%s2899_s26 + $0x70] sm:$0xff] %v1867_v13  }
 0x1d9   : > { %1982 = vst [vmem:[%s2903_s28 + $0x70] sm:$0xff] %v1947_v15  }
 0x1da   : > { %2418 = shalt.err (!%p2415_p13)
}
 0x1db   : > { %s2419_s26 = scalar_lea.hbm %s2938_s5, 2048  ;;  %s2423_s11 = scalar_lea.hbm %s3040_s4, 8192 }
 0x1dc   : > { %p2420_p5 = scmp.ne.s32.totalorder %s2938_s5, %s2419_s26  ;;  %p2424_p3 = scmp.lt.u32.totalorder %s2938_s5, %s3040_s4 }
 0x1dd   : > { %p2425_p7 = scmp.lt.u32.totalorder %s2423_s11, %s2419_s26  ;;  %p2427_p1 = scmp.lt.u32.totalorder %s2419_s26, %s2938_s5 }
 0x1de   : > { %p2421_p10 = pnand %p2420_p5, %p2733_p8 }
 0x1df   : > { %p2426_p12 = por %p2425_p7, %p2424_p3 }
 0x1e0   : > { %p2422_p0 = pneg %p2421_p10 }
 0x1e1   : > { %p2428_p2 = por %p2427_p1, %p2426_p12 }
 0x1e3   : > { %p2429_p9 = pnand %p2428_p2, %p2422_p0 }
 0x1e5   : > { %2432 = shalt.err (!%p2429_p9)
}
 0x1e6   : > { %s2556_s13 = smov 64   ;;  %s2557_s15 = smov 4  }
 0x1e7   : > { %2140 = dma.vmem_to_hbm [thread:$0]  (%p2733_p8), %s2941_s21, 2048, %s2938_s5, %s1379_s16, %s2556_s13, %s2556_s13, %s2557_s15  }
 0x1e8   : > { %s1384_s29 = scalar_lea.sflag [#allocation12], %s2837_s9  ;;  %s2433_s30 = scalar_lea.vmem %s2949_s2, 2048 }
 0x1e9   : > { %p2434_p4 = scmp.ne.s32.totalorder %s2949_s2, %s2433_s30  ;;  %s2558_s6 = smov [#allocation11]  }
 0x1ea   : > { %s2437_s18 = sshll.u32 %s2558_s6, 4  ;;  %s2438_s18 = int_to_ptr.vmem [resolvable:$false] %s2437_s18 }
 0x1eb   : > { %p2435_p6 = pnand %p2434_p4, %p2733_p8  ;;  %s2439_s27 = scalar_lea.vmem %s2438_s18, 4096 }
 0x1ec   : > { %p2440_p13 = scmp.lt.s32.totalorder %s2949_s2, %s2438_s18  ;;  %p2441_p5 = scmp.lt.s32.totalorder %s2439_s27, %s2433_s30 }
 0x1ed   : > { %p2436_p11 = pneg %p2435_p6 }
 0x1ee   : > { %p2442_p10 = por %p2441_p5, %p2440_p13 }
 0x1f0   : > { %p2443_p0 = pnand %p2442_p10, %p2436_p11 }
 0x1f2   : > { %2446 = shalt.err (!%p2443_p0)
}
 0x1f3   : > { %s2447_s21 = scalar_lea.hbm %s2947_s14, 2048  ;;  %s2451_s26 = scalar_lea.hbm %s3081_s8, 8192 }
 0x1f4   : > { %p2448_p3 = scmp.ne.s32.totalorder %s2947_s14, %s2447_s21  ;;  %p2452_p1 = scmp.lt.u32.totalorder %s2947_s14, %s3081_s8 }
 0x1f5   : > { %p2453_p2 = scmp.lt.u32.totalorder %s2451_s26, %s2447_s21  ;;  %p2455_p4 = scmp.lt.u32.totalorder %s2447_s21, %s2947_s14 }
 0x1f6   : > { %p2449_p7 = pnand %p2448_p3, %p2733_p8 }
 0x1f7   : > { %p2454_p9 = por %p2453_p2, %p2452_p1 }
 0x1f8   : > { %p2450_p12 = pneg %p2449_p7 }
 0x1f9   : > { %p2456_p6 = por %p2455_p4, %p2454_p9 }
 0x1fb   : > { %p2457_p11 = pnand %p2456_p6, %p2450_p12 }
 0x1fd   : > { %2460 = shalt.err (!%p2457_p11)
}
 0x1fe   : > { %2141 = dma.vmem_to_hbm [thread:$0]  (%p2733_p8), %s2949_s2, 2048, %s2947_s14, %s1384_s29, %s2556_s13, %s2556_s13, %s2557_s15  }
 0x1ff PF: > { %s3082_s11 = sld [smem:[#allocation19_spill]]  ;;  %s3083_s17 = sld [smem:[#allocation20_spill]] }
 0x200   : > { %p2170_p13 = scmp.ge.s32.totalorder %s2547_s25, 2 }
 0x205   : > { %s1432_s22 = sand.u32 1, %s3082_s11   ;;  %p3084_p5 = scmp.ne.s32.totalorder %s3083_s17, 0 }
 0x206   : > { %s1433_s30 = scalar_lea.sflag [#allocation4], %s1432_s22 }
 0x207   : > { %p2159_p10 = pnand %p2170_p13, %p3084_p5 }
 0x209   : > { %2510 = dma.done.wait (!%p2159_p10), %s1433_s30, 2048  }
 0x20a   : > { %2512 = vsyncadd (!%p2159_p10), %s1433_s30, 4294965248  ;;  %s1442_s10 = scalar_lea.sflag [#allocation12], %s1432_s22 }
 0x20b   : > { %2514 = dma.done.wait (!%p2159_p10), %s1442_s10, 2048  }
 0x20c   : > { %2516 = vsyncadd (!%p2159_p10), %s1442_s10, 4294965248  ;;  %s29_s25 = sadd.s32 1, %s2547_s25   ;;  %s3085_s9 = sld [smem:[#allocation21_spill]] }
 0x20d   : > { %p26_p0 = scmp.ge.s32.totalorder %s29_s25, 6   ;;  %s3086_s18 = smov %s2523_s19 }
 0x20e   : > { %s3087_s19 = smov %s2527_s20  ;;  %s3088_s20 = smov %s2746_s3 }
 0x20f   : > { %s3089_s21 = smov %s2539_s23  ;;  %s3090_s22 = smov %s2543_s24 }
 0x210   : > { %s3092_s24 = smov %s3098_s12  ;;  %28 = sbr.rel (!%p26_p0) target bundleno = 16 (0x10), region = 119 }
 0x212   : > { %s3091_s23 = smov %s3085_s9 }
 0x217   :  { %1447 = vsyncpa [#allocation3], 1 }
 0x218   :  { %1449 = vsyncpa [#allocation3 + $0x1], 1 }
 0x219   :  { %1450 = vsyncpa [#allocation6], 1 }
 0x21a   :  { %1452 = vsyncpa [#allocation6 + $0x1], 1 }
 0x21b   :  { %1453 = vsyncpa [#allocation9], 1 }
 0x21c   :  { %1454 = vsyncpa [#allocation4], 1 }
 0x21d   :  { %1456 = vsyncpa [#allocation4 + $0x1], 1 }
 0x21e   :  { %1457 = vsyncpa [#allocation12], 1 }
 0x21f   :  { %1459 = vsyncpa [#allocation12 + $0x1], 1 }

</bundles_post_ra>
